<compile_context>
chip_gen: v6e
topology: v6e:2x2x1
jax: 0.10.0
libtpu: 0.0.40
codegen_flags: <defaults>
</compile_context>

<pallas_src>
import functools

import jax
import jax.numpy as jnp
import numpy as np
from jax import lax
from jax.experimental import pallas as pl
from jax.experimental.pallas import tpu as pltpu


def _round_up(x, m):
    return ((x + m - 1) // m) * m


def _device_defaults():
    """Per-generation tuning knobs (tile sizes, VMEM limit, exp dtype)."""
    try:
        kind = jax.devices()[0].device_kind.lower()
    except Exception:  # pragma: no cover - defensive
        kind = ""
    if "v7" in kind:
        # 64 MiB VMEM per TC, 2 TCs, bf16 EUP path.
        return dict(tile_q=512, tile_kv=1024, vmem_limit=48 * 2**20,
                    exp_dtype=jnp.bfloat16)
    if "v6" in kind:
        # 128 MiB VMEM, bf16 EUP path -> big tiles.
        return dict(tile_q=1024, tile_kv=2048, vmem_limit=100 * 2**20,
                    exp_dtype=jnp.bfloat16)
    if "v5" in kind:
        # 128 MiB VMEM but no bf16 VPU/EUP -> keep exp in f32.
        return dict(tile_q=1024, tile_kv=2048, vmem_limit=96 * 2**20,
                    exp_dtype=jnp.float32)
    # Unknown / older generation: stay conservative.
    return dict(tile_q=512, tile_kv=512, vmem_limit=32 * 2**20,
                exp_dtype=jnp.float32)


def _pick_tiles(n, tq_target, tkv_target):
    """Lane-aligned (tq, tkv, n_pad) with tkv a multiple of tq.

    Never returns tile == n for large non-divisible N; instead N is padded to
    a multiple of tkv and padded kv tokens are masked in the kernel.
    """
    n128 = _round_up(max(n, 1), 128)
    tq = min(n128, _round_up(tq_target, 128))
    tkv = min(n128, _round_up(tkv_target, 128))
    tkv = max(tkv, tq)
    tkv = (tkv // tq) * tq              # tkv is a multiple of tq
    n_pad = _round_up(n, tkv)
    return tq, tkv, n_pad


# ---------------------------------------------------------------------------
# Stage 1: fused K/V projection (two 1x1 convs as one bf16 matmul).
# Layout: channels on sublanes, tokens (N = H*W) on lanes.
# ---------------------------------------------------------------------------
def _kv_proj_kernel(x_ref, w_ref, b_ref, k_ref, v_ref, *, c8):
    xb = x_ref[0].astype(jnp.bfloat16)                       # (C, TN) bf16
    # kv[o, n] = sum_c W_kv[c, o] * x[c, n] + b_kv[o]
    kv = lax.dot_general(
        w_ref[...], xb,
        dimension_numbers=(((0,), (0,)), ((), ())),
        preferred_element_type=jnp.float32)                  # (C8+C, TN) f32
    kv = kv + b_ref[...]                                     # (CK, 1) broadcast
    k_ref[0] = kv[:c8, :].astype(k_ref.dtype)
    v_ref[0] = kv[c8:, :].astype(v_ref.dtype)


# ---------------------------------------------------------------------------
# Stage 2: flash-style position attention with online softmax.
#   q: (C8, TQ)   k: (C8, TKV)   v: (C, TKV)   energy^T: (TKV, TQ)
# Grid: (B, Nq, Nkv) with the kv axis innermost and "arbitrary".
# ---------------------------------------------------------------------------
def _pam_attn_kernel(wq_ref, bq_ref, k_ref, v_ref, x_ref, gamma_ref, out_ref,
                     q_ref, m_ref, l_ref, acc_ref,
                     *, tkv, kv_resident, n_valid, n_pad, exp_dtype,
                     approx_recip):
    kj = pl.program_id(2)

    @pl.when(kj == 0)
    def _init():
        # q projection folded in: one small matmul per (b, qi) tile, reusing
        # the residual x block already resident in VMEM (saves the HBM write
        # + re-read of the full (B, C//8, N) q tensor).
        xb = x_ref[0].astype(jnp.bfloat16)                   # (C, TQ)
        qb = lax.dot_general(
            wq_ref[...], xb,
            dimension_numbers=(((0,), (0,)), ((), ())),
            preferred_element_type=jnp.float32)              # (C8, TQ)
        q_ref[...] = (qb + bq_ref[...]).astype(q_ref.dtype)
        m_ref[...] = jnp.full_like(m_ref, -jnp.inf)
        l_ref[...] = jnp.zeros_like(l_ref)
        acc_ref[...] = jnp.zeros_like(acc_ref)

    if kv_resident:
        # k/v blocks hold the full token axis (resident across q tiles);
        # slice this kv chunk out of VMEM (lane-aligned dynamic slice).
        start = pl.multiple_of(kj * tkv, tkv)
        kb = k_ref[0, :, pl.ds(start, tkv)]                  # (C8, TKV) bf16
        vb = v_ref[0, :, pl.ds(start, tkv)]                  # (C,  TKV) bf16
    else:
        kb = k_ref[0]                                        # (C8, TKV) bf16
        vb = v_ref[0]                                        # (C,  TKV) bf16

    qb = q_ref[...]                                          # (C8, TQ) bf16
    # energy_t[j, i] = sum_c k[c, j] * q[c, i]  (== energy[i, j] transposed)
    energy = lax.dot_general(
        kb, qb,
        dimension_numbers=(((0,), (0,)), ((), ())),
        preferred_element_type=jnp.float32)                  # (TKV, TQ) f32

    if n_valid != n_pad:                                     # static condition
        # Mask padded kv tokens (N was padded to a tile multiple).
        kv_ids = kj * tkv + lax.broadcasted_iota(jnp.int32, (tkv, 1), 0)
        energy = jnp.where(kv_ids < n_valid, energy, -jnp.inf)

    m_prev = m_ref[...]                                      # (1, TQ)
    m_new = jnp.maximum(m_prev, jnp.max(energy, axis=0, keepdims=True))
    alpha = jnp.exp(m_prev - m_new)                          # (1, TQ) f32
    # exp in bf16 on v6e/v7x (bf16 EUP path); f32 on v5e/older.
    p = jnp.exp((energy - m_new).astype(exp_dtype))          # (TKV, TQ)

    l_ref[...] = alpha * l_ref[...] + jnp.sum(
        p.astype(jnp.float32), axis=0, keepdims=True)
    # acc[c, i] += sum_j v[c, j] * p[j, i]
    acc_ref[...] = alpha * acc_ref[...] + lax.dot_general(
        vb, p.astype(vb.dtype),
        dimension_numbers=(((1,), (0,)), ((), ())),
        preferred_element_type=jnp.float32)                  # (C, TQ) f32
    m_ref[...] = m_new

    @pl.when(kj == pl.num_programs(2) - 1)
    def _finalize():
        inv_l = pl.reciprocal(l_ref[...], approx=approx_recip)   # (1, TQ)
        out_ref[0] = (gamma_ref[0, 0] * acc_ref[...] * inv_l
                      + x_ref[0]).astype(out_ref.dtype)


def pam_forward(x_nchw, wq, bq, wk, bk, wv, bv, gamma, *,
                tile_q=None, tile_kv=None, vmem_limit=None, exp_dtype=None,
                approx_recip=True, kv_resident=None, kv_buffers=None):
    """Position-attention forward.  x_nchw: (B, C, H, W) f32 -> (B, C, H, W).

    wq/wk: (C, C//8), wv: (C, C), biases (1, out), gamma (1, 1).
    Knobs default per detected TPU generation; approx_recip=False gives an
    exact softmax denominator for validation.
    """
    defaults = _device_defaults()
    tile_q = defaults["tile_q"] if tile_q is None else tile_q
    tile_kv = defaults["tile_kv"] if tile_kv is None else tile_kv
    vmem_limit = defaults["vmem_limit"] if vmem_limit is None else vmem_limit
    exp_dtype = defaults["exp_dtype"] if exp_dtype is None else exp_dtype

    B, C, H, W = x_nchw.shape
    N = H * W
    C8 = wq.shape[1]
    CK = C8 + C

    tq, tkv, n_pad = _pick_tiles(N, tile_q, tile_kv)

    x_bcn = x_nchw.reshape(B, C, N).astype(jnp.float32)      # free reshape
    if n_pad > N:
        x_bcn = jnp.pad(x_bcn, ((0, 0), (0, 0), (0, n_pad - N)))

    # bf16 weights feed the MXU in single-pass mode; biases stay f32.
    w_kv = jnp.concatenate([wk, wv], axis=1).astype(jnp.bfloat16)      # (C, CK)
    b_kv = jnp.concatenate([bk, bv], axis=1).reshape(CK, 1).astype(jnp.float32)
    wq_b = jnp.asarray(wq, jnp.float32).astype(jnp.bfloat16)           # (C, C8)
    bq_c = jnp.asarray(bq, jnp.float32).reshape(C8, 1)
    gamma_smem = jnp.asarray(gamma, jnp.float32).reshape(1, 1)

    # ---------------- Stage 1: fused K/V projection ----------------
    tn = tkv
    k, v = pl.pallas_call(
        functools.partial(_kv_proj_kernel, c8=C8),
        out_shape=(
            jax.ShapeDtypeStruct((B, C8, n_pad), jnp.bfloat16),
            jax.ShapeDtypeStruct((B, C, n_pad), jnp.bfloat16),
        ),
        grid_spec=pltpu.PrefetchScalarGridSpec(
            num_scalar_prefetch=0,
            grid=(B, n_pad // tn),
            in_specs=[
                pl.BlockSpec((1, C, tn), lambda b, n: (b, 0, n)),   # x
                pl.BlockSpec((C, CK), lambda b, n: (0, 0)),         # [Wk|Wv] bf16
                pl.BlockSpec((CK, 1), lambda b, n: (0, 0)),         # bias f32
            ],
            out_specs=(
                pl.BlockSpec((1, C8, tn), lambda b, n: (b, 0, n)),  # k
                pl.BlockSpec((1, C, tn), lambda b, n: (b, 0, n)),   # v
            ),
        ),
        compiler_params=pltpu.CompilerParams(
            dimension_semantics=("parallel", "parallel"),
            vmem_limit_bytes=vmem_limit),
    )(x_bcn, w_kv, b_kv)

    # ---------------- Stage 2: tiled flash attention ----------------
    # Make k/v VMEM-resident across q tiles when they fit: loaded once per
    # batch instead of re-streamed N/tq times from HBM.
    if kv_resident is None:
        kv_bytes = 2 * (C8 + C) * n_pad * 2                  # 2 pipeline bufs
        other = (2 * 2 * C * tq * 4                          # x + out blocks
                 + C * tq * 4 + tkv * tq * 4                 # acc + p temp
                 + C8 * tq * 2 + 2 * C * CK * 2 + 8 * tq)    # q scratch, W, m/l
        kv_resident = (kv_bytes + other) < int(0.75 * vmem_limit)

    if kv_resident:
        k_spec = pl.BlockSpec((1, C8, n_pad), lambda b, qi, kj: (b, 0, 0))
        v_spec = pl.BlockSpec((1, C, n_pad), lambda b, qi, kj: (b, 0, 0))
    else:
        # Streaming fallback for very large N (e.g. v7x 64 MiB VMEM).
        extra = {}
        if kv_buffers is not None:
            # Deeper k/v buffering hides the stream on DMA-exposed chips (v5e).
            extra = dict(pipeline_mode=pl.Buffered(kv_buffers))
        k_spec = pl.BlockSpec((1, C8, tkv), lambda b, qi, kj: (b, 0, kj), **extra)
        v_spec = pl.BlockSpec((1, C, tkv), lambda b, qi, kj: (b, 0, kj), **extra)

    out_bcn = pl.pallas_call(
        functools.partial(
            _pam_attn_kernel, tkv=tkv, kv_resident=kv_resident,
            n_valid=N, n_pad=n_pad, exp_dtype=exp_dtype,
            approx_recip=approx_recip),
        out_shape=jax.ShapeDtypeStruct((B, C, n_pad), jnp.float32),
        grid_spec=pltpu.PrefetchScalarGridSpec(
            num_scalar_prefetch=0,
            grid=(B, n_pad // tq, n_pad // tkv),
            in_specs=[
                pl.BlockSpec((C, C8), lambda b, qi, kj: (0, 0)),         # Wq bf16
                pl.BlockSpec((C8, 1), lambda b, qi, kj: (0, 0)),         # bq f32
                k_spec,
                v_spec,
                pl.BlockSpec((1, C, tq), lambda b, qi, kj: (b, 0, qi)),  # x resid
                pl.BlockSpec(memory_space=pltpu.MemorySpace.SMEM),       # gamma
            ],
            out_specs=pl.BlockSpec((1, C, tq), lambda b, qi, kj: (b, 0, qi)),
            scratch_shapes=[
                pltpu.VMEM((C8, tq), jnp.bfloat16),   # projected q tile
                pltpu.VMEM((1, tq), jnp.float32),     # running max  m
                pltpu.VMEM((1, tq), jnp.float32),     # running sum  l
                pltpu.VMEM((C, tq), jnp.float32),     # output accumulator
            ],
        ),
        compiler_params=pltpu.CompilerParams(
            dimension_semantics=("parallel", "parallel", "arbitrary"),
            vmem_limit_bytes=vmem_limit),
    )(wq_b, bq_c, k, v, x_bcn, gamma_smem)

    if n_pad > N:
        out_bcn = out_bcn[:, :, :N]
    return out_bcn.reshape(B, C, H, W)


# ---------------------------------------------------------------------------
# Pure-JAX f32 reference mirroring the PyTorch forward (for validation).
# ---------------------------------------------------------------------------
def pam_reference(x_nchw, wq, bq, wk, bk, wv, bv, gamma):
    B, C, H, W = x_nchw.shape
    N = H * W
    x_flat = x_nchw.reshape(B, C, N)                                   # (B, C, N)
    q = jnp.einsum('bcn,ck->bkn', x_flat, wq) + bq.T[None]             # (B, C8, N)
    k = jnp.einsum('bcn,ck->bkn', x_flat, wk) + bk.T[None]             # (B, C8, N)
    v = jnp.einsum('bcn,cd->bdn', x_flat, wv) + bv.T[None]             # (B, C, N)
    energy = jnp.einsum('bkn,bkm->bnm', q, k)                          # (B, N, N)
    attention = jax.nn.softmax(energy, axis=-1)
    out = jnp.einsum('bcn,bmn->bcm', v, attention)                     # (B, C, N)
    return (gamma[0, 0] * out + x_flat).reshape(B, C, H, W)


if __name__ == "__main__":
    key = jax.random.PRNGKey(0)
    B, C = 2, 32                      # in_dim must be >= 8 (C // 8 conv)
    C8 = C // 8

    ks = jax.random.split(key, 7)
    wq = jax.random.normal(ks[1], (C, C8), jnp.float32) * 0.1   # query_conv (C -> C//8)
    bq = jax.random.normal(ks[2], (1, C8), jnp.float32) * 0.1
    wk = jax.random.normal(ks[3], (C, C8), jnp.float32) * 0.1   # key_conv   (C -> C//8)
    bk = jax.random.normal(ks[4], (1, C8), jnp.float32) * 0.1
    wv = jax.random.normal(ks[5], (C, C), jnp.float32) * 0.1    # value_conv (C -> C)
    bv = jax.random.normal(ks[6], (1, C), jnp.float32) * 0.1
    # PyTorch inits gamma to 0; use a nonzero value so the attention path is exercised.
    gamma = jnp.full((1, 1), 0.5, jnp.float32)

    def check(x, **kw):
        out = jax.block_until_ready(
            pam_forward(x, wq, bq, wk, bk, wv, bv, gamma, **kw))
        ref = pam_reference(x, wq, bq, wk, bk, wv, bv, gamma)
        # bf16 q/k/v/p operands + approx reciprocal (f32 accumulation).
        np.testing.assert_allclose(np.asarray(out), np.asarray(ref),
                                   rtol=2e-2, atol=3e-2)

    # 1) Multi-tile online-softmax path, resident k/v (N=256, 2x2 q/kv tiles).
    x1 = jax.random.normal(ks[0], (B, C, 16, 16), jnp.float32)
    check(x1, tile_q=128, tile_kv=128)

    # 2) Non-128-divisible spatial size (N=144) -> padded + masked kv tokens.
    x2 = jax.random.normal(jax.random.PRNGKey(1), (B, C, 12, 12), jnp.float32)
    check(x2, tile_q=128, tile_kv=128)

    # 3) Streaming (non-resident) k/v fallback path.
    check(x1, tile_q=128, tile_kv=128, kv_resident=False)

    print("KERNEL_OK")
</pallas_src>

<mosaic_0001>
module attributes {stable_mosaic.version = 11 : i64} {
  func.func @_kv_proj_kernel(%arg0: i32, %arg1: i32, %arg2: memref<1x32x128xf32, #tpu.memory_space<vmem>>, %arg3: memref<32x36xbf16, #tpu.memory_space<vmem>>, %arg4: memref<36x1xf32, #tpu.memory_space<vmem>>, %arg5: memref<1x4x128xbf16, #tpu.memory_space<vmem>>, %arg6: memref<1x32x128xbf16, #tpu.memory_space<vmem>>) attributes {dimension_semantics = [#tpu.dimension_semantics<parallel>, #tpu.dimension_semantics<parallel>], iteration_bounds = array<i64: 2, 2>, scalar_prefetch = 0 : i64, scratch_operands = 0 : i64, tpu.core_type = #tpu.core_type<tc>, window_params = [{transform_indices = @transform_0, window_bounds = array<i64: 1, 32, 128>}, {pipeline_mode = #tpu.pipeline_mode<synchronous>, transform_indices = @transform_1, window_bounds = array<i64: 32, 36>}, {pipeline_mode = #tpu.pipeline_mode<synchronous>, transform_indices = @transform_2, window_bounds = array<i64: 36, 1>}, {transform_indices = @transform_3, window_bounds = array<i64: 1, 4, 128>}, {transform_indices = @transform_4, window_bounds = array<i64: 1, 32, 128>}]} {
    %c0 = arith.constant 0 : index
    %c0_0 = arith.constant 0 : index
    %c0_1 = arith.constant 0 : index
    %0 = vector.load %arg2[%c0, %c0_0, %c0_1] : memref<1x32x128xf32, #tpu.memory_space<vmem>>, vector<1x32x128xf32>
    %1 = vector.shape_cast %0 : vector<1x32x128xf32> to vector<32x128xf32>
    %2 = arith.truncf %1 : vector<32x128xf32> to vector<32x128xbf16>
    %c0_2 = arith.constant 0 : index
    %c0_3 = arith.constant 0 : index
    %3 = vector.load %arg3[%c0_2, %c0_3] : memref<32x36xbf16, #tpu.memory_space<vmem>>, vector<32x36xbf16>
    %cst = arith.constant dense<0.000000e+00> : vector<36x128xf32>
    %4 = tpu.matmul %3, %2, %cst {dimension_numbers = #tpu.dot_dimension_numbers<[0], [0], [1], [1], [0, 1, 1, 1], [], []>} : vector<32x36xbf16>, vector<32x128xbf16>, vector<36x128xf32> -> vector<36x128xf32>
    %c0_4 = arith.constant 0 : index
    %c0_5 = arith.constant 0 : index
    %5 = vector.load %arg4[%c0_4, %c0_5] : memref<36x1xf32, #tpu.memory_space<vmem>>, vector<36x1xf32>
    %6 = vector.broadcast %5 : vector<36x1xf32> to vector<36x128xf32>
    %7 = arith.addf %4, %6 : vector<36x128xf32>
    %8 = vector.extract_strided_slice %7 {offsets = [0, 0], sizes = [4, 128], strides = [1, 1]} : vector<36x128xf32> to vector<4x128xf32>
    %9 = arith.truncf %8 : vector<4x128xf32> to vector<4x128xbf16>
    %c0_6 = arith.constant 0 : index
    %c0_7 = arith.constant 0 : index
    %c0_8 = arith.constant 0 : index
    %10 = vector.load %arg5[%c0_6, %c0_7, %c0_8] : memref<1x4x128xbf16, #tpu.memory_space<vmem>>, vector<1x4x128xbf16>
    %11 = vector.shape_cast %10 : vector<1x4x128xbf16> to vector<4x128xbf16>
    %12 = vector.shape_cast %9 : vector<4x128xbf16> to vector<1x4x128xbf16>
    tpu.vector_store %arg5[%c0_6, %c0_7, %c0_8], %12 {strides = array<i32>} : memref<1x4x128xbf16, #tpu.memory_space<vmem>>, vector<1x4x128xbf16>,
    %13 = vector.extract_strided_slice %7 {offsets = [4, 0], sizes = [32, 128], strides = [1, 1]} : vector<36x128xf32> to vector<32x128xf32>
    %14 = arith.truncf %13 : vector<32x128xf32> to vector<32x128xbf16>
    %c0_9 = arith.constant 0 : index
    %c0_10 = arith.constant 0 : index
    %c0_11 = arith.constant 0 : index
    %15 = vector.load %arg6[%c0_9, %c0_10, %c0_11] : memref<1x32x128xbf16, #tpu.memory_space<vmem>>, vector<1x32x128xbf16>
    %16 = vector.shape_cast %15 : vector<1x32x128xbf16> to vector<32x128xbf16>
    %17 = vector.shape_cast %14 : vector<32x128xbf16> to vector<1x32x128xbf16>
    tpu.vector_store %arg6[%c0_9, %c0_10, %c0_11], %17 {strides = array<i32>} : memref<1x32x128xbf16, #tpu.memory_space<vmem>>, vector<1x32x128xbf16>,
    return
  }
  func.func @transform_0(%arg0: i32, %arg1: i32) -> (i32, i32, i32) {
    %c0_i32 = arith.constant 0 : i32
    %c0_i32_0 = arith.constant 0 : i32
    return %arg0, %c0_i32, %arg1 : i32, i32, i32
  }
  func.func @transform_1(%arg0: i32, %arg1: i32) -> (i32, i32) {
    %c0_i32 = arith.constant 0 : i32
    %c0_i32_0 = arith.constant 0 : i32
    %c0_i32_1 = arith.constant 0 : i32
    return %c0_i32, %c0_i32_0 : i32, i32
  }
  func.func @transform_2(%arg0: i32, %arg1: i32) -> (i32, i32) {
    %c0_i32 = arith.constant 0 : i32
    %c0_i32_0 = arith.constant 0 : i32
    %c0_i32_1 = arith.constant 0 : i32
    return %c0_i32, %c0_i32_0 : i32, i32
  }
  func.func @transform_3(%arg0: i32, %arg1: i32) -> (i32, i32, i32) {
    %c0_i32 = arith.constant 0 : i32
    %c0_i32_0 = arith.constant 0 : i32
    return %arg0, %c0_i32, %arg1 : i32, i32, i32
  }
  func.func @transform_4(%arg0: i32, %arg1: i32) -> (i32, i32, i32) {
    %c0_i32 = arith.constant 0 : i32
    %c0_i32_0 = arith.constant 0 : i32
    return %arg0, %c0_i32, %arg1 : i32, i32, i32
  }
}

</mosaic_0001>

<bundles_post_ra>
// kernel: tpu_custom_call.1
= control target key start
LH: loop header
LB: loop body
LE: loop exit
PB: predicated region body
PF: predicated region fallthrough
CT: control target
= control target key end

     0   :  { %10 = vsyncpa [#allocation3], 0  ;;  %s1167_s0 = inlined_call_operand.hbm [shape: f32[2,32,256], index: 0, kind: input, shape index: {}]   ;;  %s1168_s1 = inlined_call_operand.vmem [shape: bf16[32,36], index: 1, kind: input, shape index: {}]   ;;  %s1169_s2 = inlined_call_operand.vmem [shape: f32[36,1], index: 2, kind: input, shape index: {}]   ;;  %s1170_s3 = inlined_call_operand.hbm [shape: bf16[2,4,256], index: 3, kind: output, shape index: {0}]   ;;  %s1171_s4 = inlined_call_operand.hbm [shape: bf16[2,32,256], index: 4, kind: output, shape index: {1}]  }
   0x1   :  { %12 = vsyncpa [#allocation3 + $0x1], 0 }
   0x2   :  { %13 = vsyncpa [#allocation4], 0 }
   0x3   :  { %15 = vsyncpa [#allocation4 + $0x1], 0 }
   0x4   :  { %16 = vsyncpa [#allocation7], 0 }
   0x5   :  { %18 = vsyncpa [#allocation7 + $0x1], 0  ;;  %s929_s15 = smov 0   ;;  %s931_s16 = smov 0  }
   0x6   :  { %s933_s17 = smov 0   ;;  %s935_s18 = smov 0  }
   0x7   :  { %s937_s19 = smov 0   ;;  %s939_s20 = smov 0  }
   0x8   :  { %s941_s21 = smov 0   ;;  %s943_s22 = smov 0  }
   0x9 LB: > { %1175 = sst [smem:[#allocation11_spill]] %s862_s15  ;;  %s580_s23 = sadd.s32 4294967295, %s890_s22   ;;  %s890_s22 = sphi %s943_s22, %s24_s22   ;;  %s886_s21 = sphi %s941_s21, %s1194_s21   ;;  %s882_s20 = sphi %s939_s20, %s1193_s20   ;;  %s878_s19 = sphi %s937_s19, %s1192_s19   ;;  %s874_s18 = sphi %s935_s18, %s1191_s18   ;;  %s870_s17 = sphi %s933_s17, %s1190_s17   ;;  %s866_s16 = sphi %s931_s16, %s1189_s16   ;;  %s862_s15 = sphi %s929_s15, %s1188_s15  }
   0xa   : > { %s581_s24 = sadd.s32 4294967294, %s890_s22   ;;  %s33_s25 = sadd.s32 1, %s882_s20 }
   0xb   : > { %s36_s26 = sadd.s32 1, %s886_s21  ;;  %p34_p0 = scmp.ge.s32.totalorder %s33_s25, 2 }
   0xc   : > { %s45_s27 = sadd.s32 1, %s870_s17  ;;  %p52_p1 = scmp.ne.s32.totalorder %s870_s17, %s866_s16 }
   0xd   : > { %p53_p2 = scmp.eq.s32.totalorder %s890_s22, 0  ;;  %s1196_s25 = smov (%p34_p0, %s33_s25), 0 }
   0xe   : > { %1176 = sst [smem:[#allocation12_spill]] %s1196_s25  ;;  %s1198_s26 = smov (!%p34_p0, %s36_s26), %s886_s21 }
   0xf   : > { %s41_s28 = ssub.s32 %s882_s20, %s1196_s25  ;;  %p982_p3 = por %p53_p2, %p52_p1 }
  0x10   : > { %p38_p4 = scmp.ge.s32.totalorder %s1198_s26, 2  ;;  %p58_p5 = scmp.ne.s32.totalorder %s866_s16, %s862_s15 }
  0x11   : > { %p59_p6 = scmp.eq.s32.totalorder %s580_s23, 0  ;;  %p126_p7 = scmp.eq.s32.totalorder %s580_s23, 3 }
  0x12   : > { %s1200_s26 = smov (%p38_p4, %s1198_s26), 0  ;;  %p132_p10 = scmp.eq.s32.totalorder %s581_s24, 3 }
  0x13   : > { %1178 = sst [smem:[#allocation13_spill]] %s1200_s26  ;;  %p990_p8 = por %p59_p6, %p58_p5 }
  0x14   : > { %p994_p9 = por %p126_p7, %p52_p1  ;;  %s40_s6 = ssub.s32 %s886_s21, %s1200_s26 }
  0x15   : > { %s42_s7 = sor.u32 %s41_s28, %s40_s6  ;;  %p1000_p12 = por %p132_p10, %p58_p5 }
  0x16   : > { %p43_p11 = scmp.eq.s32.totalorder %s42_s7, 0  ;;  %p657_p13 = scmp.lt.s32.totalorder %s890_s22, 4 }
  0x17   : > { %s186_s9 = sand.u32 1, %s870_s17   ;;  %s585_s12 = sshll.u32 %s886_s21, 3 }
  0x18   : > { %s1007_s10 = scalar_select %p43_p11, %s870_s17, %s45_s27  }
  0x19   : > { %s584_s11 = sshll.u32 %s186_s9, 5  ;;  %s195_s13 = sadd.s32 %s882_s20, %s585_s12 }
  0x1a   : > { %s190_s14 = scalar_lea.vmem [#allocation2], %s584_s11  ;;  %s586_s25 = sshll.u32 %s195_s13, 7 }
  0x1b   : > { %s198_s23 = sshll.u32 %s190_s14, 4  ;;  %s197_s24 = scalar_lea.hbm %s1167_s0, %s586_s25  ;;  %s199_s23 = int_to_ptr.vmem [resolvable:$true] %s198_s23 }
  0x1c   : > { %p1016_p0 = pnand %p657_p13, %p982_p3  ;;  %s187_s6 = scalar_lea.sflag [#allocation3], %s186_s9 }
  0x1d   : > { %s749_s27 = scalar_lea.vmem %s199_s23, 512  ;;  %s892_s7 = smov [#allocation2]  }
  0x1e   : > { %p738_p1 = pneg %p1016_p0  ;;  %p750_p2 = scmp.ne.s32.totalorder %s199_s23, %s749_s27 }
  0x1f   : > { %s754_s11 = sshll.u32 %s892_s7, 4  ;;  %s755_s11 = int_to_ptr.vmem [resolvable:$false] %s754_s11 }
  0x20   : > { %p752_p4 = pnand %p750_p2, %p738_p1  ;;  %s756_s12 = scalar_lea.vmem %s755_s11, 1024 }
  0x21   : > { %p757_p6 = scmp.lt.s32.totalorder %s199_s23, %s755_s11  ;;  %p758_p7 = scmp.lt.s32.totalorder %s756_s12, %s749_s27 }
  0x22   : > { %p753_p5 = pneg %p752_p4 }
  0x23   : > { %p759_p10 = por %p758_p7, %p757_p6 }
  0x25   : > { %p760_p11 = pnand %p759_p10, %p753_p5 }
  0x27   : > { %763 = shalt.err (!%p760_p11)
}
  0x28   : > { %s893_s15 = smov 256   ;;  %s894_s25 = smov 128  }
  0x29   : > { %s895_s26 = smov 8   ;;  %p587_p3 = scmp.ge.s32.totalorder %s890_s22, 1 }
  0x2a   : > { %649 = dma.hbm_to_vmem [thread:$0]  (!%p1016_p0), %s197_s24, 512, %s199_s23, %s187_s6, %s893_s15, %s894_s25, %s895_s26  }
  0x2b   : > { %p206_p13 = scmp.lt.s32.totalorder %s890_s22, 5 }
  0x2d   : > { %p207_p1 = pnand %p587_p3, %p206_p13 }
  0x2e   : > { %s1027_s29 = sand.u32 (!%p207_p1), 1, %s866_s16  }
  0x2f   : > { %210 = sbr.rel (%p207_p1) target bundleno = 393 (0x189), region = 32  ;;  %s588_s9 = sshll.u32 (!%p207_p1), %s1027_s29, 5 }
  0x30   : > { %s213_s13 = scalar_lea.sflag (!%p207_p1), [#allocation3], %s1027_s29  ;;  %s216_s14 = scalar_lea.vmem (!%p207_p1), [#allocation2], %s588_s9 }
  0x34   : > { %849 = dma.done.wait (%p990_p8), %s213_s13, 512  }
  0x35   : > { %851 = vsyncadd (%p990_p8), %s213_s13, 4294966784  ;;  %v896_v0 = vmov 0.0   ;;  %vm897_vm0 = vmmov 0   ;;  %v898_v1 = vmov 0   ;;  %v734_v2 = vld [vmem:[%s1168_s1] sm:$0xff]   ;;  %v735_v3 = vld [vmem:[%s1168_s1 + $0x8] sm:$0xff]  }
  0x36   : > { %620 = vmatprep.subr.bf16.mxu0 %v896_v0  ;;  %636 = vmatprep.subr.bf16.mxu1 %v896_v0  ;;  %v249_v4 = vld [vmem:[%s216_s14 + $0x10] sm:$0xff]  ;;  %v250_v5 = vld [vmem:[%s216_s14 + $0x18] sm:$0xff]  ;;  %v247_v6 = vld [vmem:[%s216_s14] sm:$0xff]  ;;  %vm315_vm1 = vcmask 261120   ;;  %s589_s23 = sshll.u32 %s1027_s29, 1  ;;  %s590_s12 = sshll.u32 %s1027_s29, 4 }
  0x37   : > { %624 = vmatprep.mubr.msk.bf16.mxu0 %vm897_vm0, %v896_v0  ;;  %628 = vmatprep.mubr.msk.bf16.mxu1 %vm897_vm0, %v896_v0  ;;  %v252_v7 = vpack.c.bf16 %v250_v5, %v249_v4  ;;  %v248_v8 = vld [vmem:[%s216_s14 + $0x8] sm:$0xff]  ;;  %v259_v11 = vld [vmem:[%s1169_s2 + $0x10] sm:$0xff]  ;;  %v257_v12 = vld [vmem:[%s1169_s2] sm:$0xff]  ;;  %s604_s14 = sshll.u32 %s878_s19, 1  ;;  %s238_s6 = scalar_lea.vmem [#allocation5], %s589_s23  ;;  %vm399_vm2 = vcmask 1041408  }
  0x38   : > { %732 = vset.pattern.permute.xlu1 %v898_v1  ;;  %299 = vxpose.xlu0.c.b16.start [1/2] (short) (narrow) %v734_v2, 48  ;;  %v258_v9 = vld [vmem:[%s1169_s2 + $0x8] sm:$0xff]  ;;  %v251_v10 = vpack.c.bf16 %v248_v8, %v247_v6  ;;  %v261_v13 = vld [vmem:[%s1169_s2 + $0x20] sm:$0xf]  ;;  %v260_v14 = vld [vmem:[%s1169_s2 + $0x18] sm:$0xff]  ;;  %s440_s24 = sadd.s32 %s874_s18, %s604_s14  ;;  %s444_s30 = sshll.u32 %s238_s6, 4  ;;  %s1067_s30 = int_to_ptr.vmem [resolvable:$true] %s444_s30 }
  0x39   : > { %269 = vperm.xlu1 %732, %v258_v9   ;;  %621 = vmatpush3.bf16.msra.mxu0 %v252_v7  ;;  %s605_s28 = sshll.u32 %s440_s24, 5  ;;  %vm400_vm3 = vcmask 1045508   ;;  %s424_s15 = scalar_lea.sflag [#allocation4], %s1027_s29 }
  0x3a   : > { %638 = vmatpush3.bf16.msra.mxu1 %v252_v7  ;;  %622 = vmatprep.subr.bf16.mxu0 %v896_v0  ;;  %s1065_s11 = scalar_lea.hbm %s1170_s3, %s605_s28  ;;  %s764_s25 = scalar_lea.vmem %s1067_s30, 32 }
  0x3b   : > { %637 = vmatprep.subr.bf16.mxu1 %v896_v0  ;;  %p765_p8 = scmp.ne.s32.totalorder %s1067_s30, %s764_s25  ;;  %s899_s26 = smov [#allocation5]  }
  0x3c   : > { %300 = vxpose.xlu0.c.b16.end [2/2] (short) (narrow) %v735_v3, 48  ;;  %s768_s9 = sshll.u32 %s899_s26, 4  ;;  %s769_s9 = int_to_ptr.vmem [resolvable:$false] %s768_s9 }
  0x3d   : > { %274 = vperm.xlu1 %732, %v259_v11   ;;  %623 = vmatpush3.bf16.msra.mxu0 %v251_v10  ;;  %p766_p0 = pnand %p765_p8, %p994_p9  ;;  %s770_s13 = scalar_lea.vmem %s769_s9, 64 }
  0x3e   : > { %639 = vmatpush3.bf16.msra.mxu1 %v251_v10  ;;  %p771_p4 = scmp.lt.s32.totalorder %s1067_s30, %s769_s9  ;;  %p772_p5 = scmp.lt.s32.totalorder %s770_s13, %s764_s25 }
  0x3f   : > { %p767_p2 = pneg %p766_p0 }
  0x40   : > { %p773_p6 = por %p772_p5, %p771_p4 }
  0x41   : > { %264 = vperm.xlu1 %732, %v257_v12  }
  0x42   : > { %p774_p7 = pnand %p773_p6, %p767_p2 }
  0x45   : > { %733 = vset.pattern.permute.xlu0 %v898_v1  ;;  %284 = vperm.xlu1 %732, %v261_v13  }
  0x49   : > { %279 = vperm.xlu0 %733, %v260_v14  }
  0x9a   : > { %v307_v15 = vpop.trf.xlu0 }
  0x9b   : > { %625 = vmatmul.mubr.msk.bf16.vlgmr.msra.gmra.mxu0 %vm315_vm1, %v307_v15 }
  0x9e   : > { %v308_v16 = vpop.trf.xlu0 }
  0x9f   : > { %629 = vmatmul.mubr.msk.bf16.vlgmr.msra.gmra.mxu1 %vm315_vm1, %v308_v16 }
  0xa0   : > { %632 = vmatprep.mubr.msk.bf16.mxu1 %vm897_vm0, %v896_v0 }
  0xa2   : > { %v309_v17 = vpop.trf.xlu0 }
  0xa7   : > { %633 = vmatmul.mubr.msk.bf16.gmra.mxu1 %vm315_vm1, %v309_v17 }
  0xb4   : > { %v270_v18 = vpop.permute.xlu1 %269 }
  0xb8   : > { %v275_v19 = vpop.permute.xlu1 %274 }
  0xbc   : > { %v265_v20 = vpop.permute.xlu1 %264 }
  0xc4   : > { %v280_v29 = vpop.permute.xlu0 %279 }
 0x15b   : > { %v359_v21 = vpop.f32.mrf.mxu0 }
 0x15c   : > { %v360_v22 = vadd.f32 %v359_v21, %v265_v20 }
 0x15d   : > { %v626_v23 = vpop.f32.mrf.mxu0 }
 0x15e   : > { %v381_v24 = vpack.c.bf16 %v360_v22, %v360_v22 }
 0x15f   : > { %v362_v25 = vpop.f32.mrf.mxu0  ;;  %v367_v26 = vpop.f32.mrf.mxu1 }
 0x160   : > { %382 = vst [vmem:[%s238_s6] sm:$0x3] %v381_v24  ;;  %v363_v27 = vadd.f32 %v362_v25, %v270_v18  ;;  %v368_v28 = vadd.f32 %v367_v26, %v275_v19 }
 0x161   : > { %v627_v30 = vpop.f32.mrf.mxu0  ;;  %v630_v31 = vpop.f32.mrf.mxu1 }
 0x162   : > { %777 = shalt.err (!%p774_p7)
}
 0x163   : > { %s778_s14 = scalar_lea.hbm %s1065_s11, 32  ;;  %s782_s28 = scalar_lea.hbm %s1170_s3, 128 }
 0x164   : > { %p779_p10 = scmp.ne.s32.totalorder %s1065_s11, %s778_s14  ;;  %p783_p13 = scmp.lt.s32.totalorder %s1065_s11, %s1170_s3 }
 0x165   : > { %p784_p1 = scmp.lt.s32.totalorder %s782_s28, %s778_s14 }
 0x166   : > { %p780_p11 = pnand %p779_p10, %p994_p9 }
 0x167   : > { %p785_p8 = por %p784_p1, %p783_p13 }
 0x168   : > { %p781_p3 = pneg %p780_p11 }
 0x16a   : > { %p786_p0 = pnand %p785_p8, %p781_p3 }
 0x16c   : > { %789 = shalt.err (!%p786_p0)
}
 0x16d   : > { %642 = dma.vmem_to_hbm [thread:$0]  (%p994_p9), %s1067_s30, 32, %s1065_s11, %s424_s15   ;;  %v611_v32 = vpack.c.bf16 %v363_v27, %v363_v27  ;;  %v612_v33 = vpack.c.bf16 %v368_v28, %v368_v28  ;;  %vm1093_vm4 = vmor %vm399_vm2, %vm400_vm3  ;;  %v370_v35 = vpop.f32.mrf.mxu1  ;;  %v601_v36 = vrot.slane %v381_v24, 10  ;;  %v285_v44 = vpop.permute.xlu1 %284 }
 0x16e   : > { %s606_s7 = sshll.u32 %s878_s19, 3  ;;  %v371_v39 = vadd.f32 %v370_v35, %v280_v29  ;;  %s245_s11 = scalar_lea.vmem [#allocation6], %s590_s12 }
 0x16f   : > { %v404_v37 = vrot.slane %v611_v32, 6  ;;  %v407_v38 = vrot.slane %v612_v33, 6  ;;  %v631_v40 = vpop.f32.mrf.mxu1  ;;  %s455_s30 = sadd.s32 %s874_s18, %s606_s7  ;;  %s458_s15 = sshll.u32 %s245_s11, 4  ;;  %s1107_s15 = int_to_ptr.vmem [resolvable:$true] %s458_s15 }
 0x170   : > { %v613_v43 = vpack.c.bf16 %v371_v39, %v371_v39  ;;  %s607_s19 = sshll.u32 %s455_s30, 6  ;;  %s429_s26 = scalar_lea.sflag [#allocation7], %s1027_s29 }
 0x171   : > { %v405_v41 = vsel %vm1093_vm4, %v601_v36, %v404_v37  ;;  %v406_v42 = vrot.slane %v404_v37, 4  ;;  %v375_v45 = vpop.f32.mrf.mxu1  ;;  %v409_v47 = vrot.slane %v407_v38, 4  ;;  %s1112_s25 = scalar_lea.hbm %s1171_s4, %s607_s19  ;;  %s790_s9 = scalar_lea.vmem %s1107_s15, 256 }
 0x172   : > { %419 = vst [vmem:[%s245_s11] sm:$0xf] %v405_v41  ;;  %v410_v48 = vrot.slane %v613_v43, 6  ;;  %v376_v49 = vadd.f32 %v375_v45, %v285_v44  ;;  %p791_p2 = scmp.ne.s32.totalorder %s1107_s15, %s790_s9  ;;  %s900_s13 = smov [#allocation6]  }
 0x173   : > { %v408_v46 = vsel %vm1093_vm4, %v406_v42, %v407_v38  ;;  %v634_v50 = vpop.f32.mrf.mxu1  ;;  %s794_s14 = sshll.u32 %s900_s13, 4  ;;  %s795_s14 = int_to_ptr.vmem [resolvable:$false] %s794_s14 }
 0x174   : > { %420 = vst [vmem:[%s245_s11 + $0x4] sm:$0xf] %v408_v46  ;;  %v411_v51 = vsel %vm1093_vm4, %v409_v47, %v410_v48  ;;  %v614_v52 = vpack.c.bf16 %v376_v49, %v376_v49  ;;  %v412_v54 = vrot.slane %v410_v48, 4  ;;  %p792_p4 = pnand %p791_p2, %p994_p9  ;;  %s796_s23 = scalar_lea.vmem %s795_s14, 512 }
 0x175   : > { %421 = vst [vmem:[%s245_s11 + $0x8] sm:$0xf] %v411_v51  ;;  %v378_v53 = vpop.f32.mrf.mxu1  ;;  %p797_p6 = scmp.lt.s32.totalorder %s1107_s15, %s795_s14  ;;  %p798_p7 = scmp.lt.s32.totalorder %s796_s23, %s790_s9 }
 0x176   : > { %v413_v55 = vrot.slane %v614_v52, 6  ;;  %p793_p5 = pneg %p792_p4 }
 0x177   : > { %v635_v56 = vpop.f32.mrf.mxu1  ;;  %p799_p10 = por %p798_p7, %p797_p6 }
 0x178   : > { %v414_v57 = vsel %vm1093_vm4, %v412_v54, %v413_v55 }
 0x179   : > { %422 = vst [vmem:[%s245_s11 + $0xc] sm:$0xf] %v414_v57  ;;  %p800_p11 = pnand %p799_p10, %p793_p5 }
 0x17b   : > { %803 = shalt.err (!%p800_p11)
}
 0x17c   : > { %s804_s24 = scalar_lea.hbm %s1112_s25, 256  ;;  %s808_s27 = scalar_lea.hbm %s1171_s4, 1024 }
 0x17d   : > { %p805_p3 = scmp.ne.s32.totalorder %s1112_s25, %s804_s24  ;;  %p809_p8 = scmp.lt.s32.totalorder %s1112_s25, %s1171_s4 }
 0x17e   : > { %p810_p0 = scmp.lt.s32.totalorder %s808_s27, %s804_s24 }
 0x17f   : > { %p806_p13 = pnand %p805_p3, %p994_p9 }
 0x180   : > { %p811_p2 = por %p810_p0, %p809_p8 }
 0x181   : > { %p807_p1 = pneg %p806_p13 }
 0x183   : > { %p812_p4 = pnand %p811_p2, %p807_p1 }
 0x185   : > { %815 = shalt.err (!%p812_p4)
}
 0x186   : > { %s901_s11 = smov 64   ;;  %s902_s19 = smov 128  }
 0x187   : > { %s903_s18 = smov 4  }
 0x188   : > { %643 = dma.vmem_to_hbm [thread:$0]  (%p994_p9), %s1107_s15, 256, %s1112_s25, %s429_s26, %s901_s11, %s902_s19, %s903_s18  }
 0x189 PF: > { %s1185_s12 = sld [smem:[#allocation11_spill]]  ;;  %p658_p5 = scmp.ge.s32.totalorder %s890_s22, 2 }
 0x18b   : > { %p651_p6 = pnand %p658_p5, %p1000_p12 }
 0x18d   : > { %p652_p7 = pneg %p651_p6 }
 0x18f   : > { %s473_s9 = sand.u32 1, %s1185_s12  }
 0x190   : > { %s474_s13 = scalar_lea.sflag [#allocation4], %s473_s9 }
 0x191   : > { %853 = dma.done.wait (%p652_p7), %s474_s13, 32  }
 0x192   : > { %855 = vsyncadd (%p652_p7), %s474_s13, 4294967264  ;;  %s483_s14 = scalar_lea.sflag [#allocation7], %s473_s9 }
 0x193   : > { %857 = dma.done.wait (%p652_p7), %s483_s14, 256  }
 0x194   : > { %859 = vsyncadd (%p652_p7), %s483_s14, 4294967040  ;;  %s24_s22 = sadd.s32 1, %s890_s22   ;;  %s1186_s5 = sld [smem:[#allocation12_spill]] }
 0x195   : > { %p21_p10 = scmp.ge.s32.totalorder %s24_s22, 6   ;;  %s1187_s29 = sld [smem:[#allocation13_spill]] }
 0x196   : > { %s1188_s15 = smov %s866_s16  ;;  %s1189_s16 = smov %s870_s17 }
 0x197   : > { %s1190_s17 = smov %s1007_s10  ;;  %s1191_s18 = smov %s882_s20 }
 0x198   : > { %s1192_s19 = smov %s886_s21  ;;  %23 = sbr.rel (!%p21_p10) target bundleno = 9 (0x9), region = 94 }
 0x19a   : > { %s1193_s20 = smov %s1186_s5 }
 0x19b   : > { %s1194_s21 = smov %s1187_s29 }
 0x19d   :  { %488 = vsyncpa [#allocation3], 1 }
 0x19e   :  { %490 = vsyncpa [#allocation3 + $0x1], 1 }
 0x19f   :  { %491 = vsyncpa [#allocation4], 1 }
 0x1a0   :  { %493 = vsyncpa [#allocation4 + $0x1], 1 }
 0x1a1   :  { %494 = vsyncpa [#allocation7], 1 }
 0x1a2   :  { %496 = vsyncpa [#allocation7 + $0x1], 1 }

</bundles_post_ra>
